<compile_context>
chip_gen: v6e
topology: v6e:2x2x1
jax: 0.10.0
libtpu: 0.0.40
codegen_flags: <defaults>
</compile_context>

<pallas_src>
import jax
import jax.numpy as jnp
from jax.experimental import pallas as pl
from jax.experimental.pallas import tpu as pltpu


def _round_up(x, m):
    return (x + m - 1) // m * m


def _tensorcores_per_device():
    """Best-effort count of TensorCores behind one JAX device.
    v5e / v6e (and v2/v3) expose one TC per device; v4/v5p megacore and v7x
    expose two, where a 'parallel' grid axis can be sharded across cores."""
    try:
        kind = str(jax.devices()[0].device_kind).lower()
    except Exception:
        return 1
    if "lite" in kind or "v5e" in kind or "v6e" in kind or "v2" in kind or "v3" in kind:
        return 1
    if any(t in kind for t in ("v4", "v5p", "v7", "7x")):
        return 2
    if "v5" in kind:   # "TPU v5" without "lite" -> v5p megacore
        return 2
    return 1


def make_prompt_band_writer(cls_num, n_ctx, seq_len, ctx_dim, dtype=jnp.float32,
                            vmem_block_budget_bytes=24 * 1024 * 1024):
    """Build a jitted, buffer-donating callable
        (baked_prompts (C, L, D), soft_ctx (n_ctx, D)) -> prompts (C, L, D)
    that rewrites only the [prefix | soft-ctx] token band of the baked slab in
    place; suffix rows are preserved through input/output aliasing."""
    assert n_ctx >= 1 and seq_len >= 1 + n_ctx
    L = seq_len
    itemsize = jnp.dtype(dtype).itemsize

    # Sublane multiple for this dtype (f32: 8, bf16: 16, int8/fp8: 32); the
    # token axis is the second-minor axis of every block.
    tok_sub = max(8, 32 // itemsize)
    band = 1 + n_ctx                           # tokens that change every call
    T_blk = min(L, _round_up(band, tok_sub))   # aligned band; may include a few
                                               # suffix rows that just pass through

    # --- class tile from a VMEM budget: double-buffered in + out band blocks.
    band_bytes_per_class = 2 * 2 * T_blk * ctx_dim * itemsize   # (in+out) x 2 buffers
    ctx_bytes = 2 * n_ctx * ctx_dim * itemsize
    cls_tile = max(1, int((vmem_block_budget_bytes - ctx_bytes) // band_bytes_per_class))
    cls_tile = min(cls_tile, cls_num)
    # Only multi-TensorCore parts benefit from forcing >= 2 "parallel" steps;
    # single-TC v5e/v6e keep the biggest tile (fewer grid steps).
    if _tensorcores_per_device() >= 2 and cls_num >= 16:
        cls_tile = min(cls_tile, pl.cdiv(cls_num, 2))
    grid = (pl.cdiv(cls_num, cls_tile),)       # partial last tile handled by Pallas

    # Scoped-VMEM limit derived from the SAME expression as the budget, so it
    # can never fall below the real double-buffered need.  Far under the 64 MiB
    # physical VMEM of v7x for any sensible budget.
    vmem_need = cls_tile * band_bytes_per_class + ctx_bytes
    vmem_limit = int(max(vmem_need + (2 << 20), 16 << 20))

    def kernel(slab_ref, ctx_ref, out_ref):
        # slab_ref / out_ref: (cls_tile, T_blk, D) window of the aliased slab.
        # Pass the aligned band through (prefix + any suffix rows inside it),
        # then overwrite the soft-context rows with the shared ctx broadcast.
        out_ref[...] = slab_ref[...]
        out_ref[:, 1:band, :] = jnp.broadcast_to(
            ctx_ref[...][None, :, :], (cls_tile, n_ctx, ctx_dim))

    writer = pl.pallas_call(
        kernel,
        out_shape=jax.ShapeDtypeStruct((cls_num, L, ctx_dim), dtype),
        grid_spec=pltpu.PrefetchScalarGridSpec(
            num_scalar_prefetch=0,
            grid=grid,
            in_specs=[
                # Aliased baked slab: only the leading T_blk token rows are read.
                pl.BlockSpec((cls_tile, T_blk, ctx_dim), lambda i: (i, 0, 0)),
                # Shared soft context, full array, constant block index
                # (fetched once and kept resident by the pipeline).
                pl.BlockSpec((n_ctx, ctx_dim), lambda i: (0, 0)),
            ],
            out_specs=pl.BlockSpec((cls_tile, T_blk, ctx_dim), lambda i: (i, 0, 0)),
        ),
        # Tokens [T_blk, L) are never visited by the grid: they keep the baked
        # suffix because the output buffer IS the (donated) baked slab.
        input_output_aliases={0: 0},
        compiler_params=pltpu.CompilerParams(
            dimension_semantics=("parallel",),
            vmem_limit_bytes=vmem_limit,
        ),
    )

    def _update(baked_prompts, soft_ctx):
        return writer(baked_prompts, soft_ctx.astype(dtype))

    # Donating arg 0 lets XLA honor the in-place alias end-to-end (no hidden
    # protective copy of the slab per call).
    return jax.jit(_update, donate_argnums=(0,))


class SoftPromptLearnerPallas:
    """JAX/Pallas re-implementation of SoftPromptLearner.forward() for
    use_avg_embedding=True, class_token_position='end' (generic context).

    prefix/suffix are static registered buffers -> pre-baked once into a
    (C, L, D) prompts slab; forward() rewrites only the [prefix | soft-ctx]
    band in place via a donated, aliased Pallas call and returns the full
    prompts array.

    NOTE: the returned prompts array aliases internal state and is donated
    (invalidated) by the NEXT forward() call - consume it before calling
    forward() again (standard in-place-update contract).
    """

    def __init__(self, cls_num, n_ctx, max_seq_len, ctx_dim, key, dtype=jnp.float32):
        self.cls_num = cls_num
        self.ctx_len = n_ctx
        self.ctx_dim = ctx_dim
        self.dtype = dtype
        suffix_len = max_seq_len - 1 - n_ctx
        assert suffix_len >= 1
        self.suffix_len = suffix_len
        self.seq_len = max_seq_len

        k1, k2, k3 = jax.random.split(key, 3)
        # soft_prompt_embedding: learnable generic context ("a photo of" token
        # embeddings in the torch module); synthetic std=0.02 init here.
        self.soft_prompt_embedding = (
            0.02 * jax.random.normal(k1, (n_ctx, ctx_dim))).astype(dtype)
        # token_prefix: per-class SOS-token embedding, shape (cls_num, 1, ctx_dim).
        self.token_prefix = (
            0.02 * jax.random.normal(k2, (cls_num, 1, ctx_dim))).astype(dtype)
        # token_avg_ele_suffix: suffix embeddings with the element-embedding
        # replacement already applied (done once in __init__ in the torch module).
        # TODO(synk): the CLIP tokenizer / token_embedding lookups of __init__
        # (and the 'middle'/'front'/raw-string paths) have no Pallas equivalent;
        # buffers are initialized synthetically and only the default
        # use_avg_embedding + 'end' forward path is implemented.
        self.token_avg_ele_suffix = (
            0.02 * jax.random.normal(k3, (cls_num, suffix_len, ctx_dim))).astype(dtype)

        # One-time bake of the static parts into the full prompts slab
        # (plain XLA, runs once at init, never per forward()).
        self._baked = jnp.concatenate(
            [self.token_prefix,
             jnp.zeros((cls_num, n_ctx, ctx_dim), dtype),   # ctx placeholder
             self.token_avg_ele_suffix],
            axis=1)

        self._update = make_prompt_band_writer(
            cls_num, n_ctx, max_seq_len, ctx_dim, dtype=dtype)

    def forward(self):
        # In-place (aliased + donated) rewrite of the ctx band of the baked slab.
        prompts = self._update(self._baked, self.soft_prompt_embedding)
        self._baked = prompts        # keep the donation chain consistent
        return prompts

    def forward_reference(self):
        ctx = jnp.broadcast_to(
            self.soft_prompt_embedding[None, :, :].astype(self.dtype),
            (self.cls_num, self.ctx_len, self.ctx_dim),
        )
        return jnp.concatenate(
            [self.token_prefix, ctx, self.token_avg_ele_suffix], axis=1
        ).astype(self.dtype)


if __name__ == "__main__":
    key = jax.random.PRNGKey(0)

    # Small shapes consistent with the module: cls_num classes, n_ctx = 3
    # ("a photo of"), reduced max sequence length, ctx_dim = transformer width.
    cls_num = 8
    n_ctx = 3
    max_seq_len = 16
    ctx_dim = 128

    learner = SoftPromptLearnerPallas(cls_num, n_ctx, max_seq_len, ctx_dim, key)

    ref = learner.forward_reference()
    prompts = jax.block_until_ready(learner.forward())
    assert prompts.shape == (cls_num, max_seq_len, ctx_dim), prompts.shape
    assert bool(jnp.array_equal(prompts, ref)), "Pallas output mismatch vs reference"

    # Second call with an updated learnable context: exercises the donated,
    # in-place alias chain (prefix/suffix stay baked, only the ctx band is
    # rewritten).  The first `prompts` array is not used past this point.
    learner.soft_prompt_embedding = (
        learner.soft_prompt_embedding + 0.5).astype(learner.dtype)
    ref2 = learner.forward_reference()
    prompts2 = jax.block_until_ready(learner.forward())
    assert bool(jnp.array_equal(prompts2, ref2)), "Pallas output mismatch after ctx update"

    print("KERNEL_OK")
</pallas_src>

<mosaic_0001>
module attributes {stable_mosaic.version = 11 : i64} {
  func.func @kernel(%arg0: i32, %arg1: memref<8x8x128xf32, #tpu.memory_space<vmem>>, %arg2: memref<3x128xf32, #tpu.memory_space<vmem>>, %arg3: memref<8x8x128xf32, #tpu.memory_space<vmem>>) attributes {dimension_semantics = [#tpu.dimension_semantics<parallel>], iteration_bounds = array<i64: 1>, scalar_prefetch = 0 : i64, scratch_operands = 0 : i64, tpu.core_type = #tpu.core_type<tc>, window_params = [{transform_indices = @transform_0, window_bounds = array<i64: 8, 8, 128>}, {pipeline_mode = #tpu.pipeline_mode<synchronous>, transform_indices = @transform_1, window_bounds = array<i64: 3, 128>}, {transform_indices = @transform_2, window_bounds = array<i64: 8, 8, 128>}]} {
    %c0 = arith.constant 0 : index
    %c0_0 = arith.constant 0 : index
    %c0_1 = arith.constant 0 : index
    %0 = vector.load %arg1[%c0, %c0_0, %c0_1] : memref<8x8x128xf32, #tpu.memory_space<vmem>>, vector<8x8x128xf32>
    %c0_2 = arith.constant 0 : index
    %c0_3 = arith.constant 0 : index
    %c0_4 = arith.constant 0 : index
    %1 = vector.load %arg3[%c0_2, %c0_3, %c0_4] : memref<8x8x128xf32, #tpu.memory_space<vmem>>, vector<8x8x128xf32>
    tpu.vector_store %arg3[%c0_2, %c0_3, %c0_4], %0 {strides = array<i32>} : memref<8x8x128xf32, #tpu.memory_space<vmem>>, vector<8x8x128xf32>,
    %c0_5 = arith.constant 0 : index
    %c0_6 = arith.constant 0 : index
    %2 = vector.load %arg2[%c0_5, %c0_6] : memref<3x128xf32, #tpu.memory_space<vmem>>, vector<3x128xf32>
    %3 = vector.shape_cast %2 : vector<3x128xf32> to vector<1x3x128xf32>
    %4 = vector.shape_cast %3 : vector<1x3x128xf32> to vector<1x3x128xf32>
    %5 = vector.broadcast %4 : vector<1x3x128xf32> to vector<8x3x128xf32>
    %c0_7 = arith.constant 0 : index
    %c1 = arith.constant 1 : index
    %c0_8 = arith.constant 0 : index
    %6 = vector.load %arg3[%c0_7, %c1, %c0_8] : memref<8x8x128xf32, #tpu.memory_space<vmem>>, vector<8x3x128xf32>
    tpu.vector_store %arg3[%c0_7, %c1, %c0_8], %5 {strides = array<i32>} : memref<8x8x128xf32, #tpu.memory_space<vmem>>, vector<8x3x128xf32>,
    return
  }
  func.func @transform_0(%arg0: i32) -> (i32, i32, i32) {
    %c0_i32 = arith.constant 0 : i32
    %c0_i32_0 = arith.constant 0 : i32
    %c0_i32_1 = arith.constant 0 : i32
    return %arg0, %c0_i32, %c0_i32_0 : i32, i32, i32
  }
  func.func @transform_1(%arg0: i32) -> (i32, i32) {
    %c0_i32 = arith.constant 0 : i32
    %c0_i32_0 = arith.constant 0 : i32
    %c0_i32_1 = arith.constant 0 : i32
    return %c0_i32, %c0_i32_0 : i32, i32
  }
  func.func @transform_2(%arg0: i32) -> (i32, i32, i32) {
    %c0_i32 = arith.constant 0 : i32
    %c0_i32_0 = arith.constant 0 : i32
    %c0_i32_1 = arith.constant 0 : i32
    return %arg0, %c0_i32, %c0_i32_0 : i32, i32, i32
  }
}

</mosaic_0001>

<bundles_post_ra>
// kernel: _update.1
= control target key start
LH: loop header
LB: loop body
LE: loop exit
PB: predicated region body
PF: predicated region fallthrough
CT: control target
= control target key end

     0   :  { %7 = vsyncpa [#allocation3], 0  ;;  %s189_s0 = inlined_call_operand.hbm [shape: f32[8,16,128], index: 0, kind: input, shape index: {}, may-alias: {0,2}]   ;;  %s190_s1 = inlined_call_operand.hbm [shape: f32[3,128], index: 1, kind: input, shape index: {}]   ;;  %s191_s2 = inlined_call_operand.hbm [shape: f32[8,16,128], index: 2, kind: output, shape index: {}, may-alias: {0,2}]  }
   0x1   :  { %8 = vsyncpa [#allocation6], 0 }
   0x2   :  { %9 = vsyncpa [#allocation4], 0  ;;  %s153_s9 = smov [#allocation2]  }
   0x3   :  { %s15_s10 = sshll.u32 %s153_s9, 4  ;;  %s16_s10 = int_to_ptr.vmem [resolvable:$true] %s15_s10 }
   0x4   :  { %s95_s11 = scalar_lea.vmem %s16_s10, 1024  ;;  %p100_p1 = scmp.lt.s32.totalorder %s16_s10, %s16_s10 }
   0x5   :  { %p96_p0 = scmp.ne.s32.totalorder %s16_s10, %s95_s11  ;;  %p101_p2 = scmp.lt.s32.totalorder %s95_s11, %s95_s11 }
   0x7   :  { %p102_p3 = por %p101_p2, %p100_p1 }
   0x9   :  { %p103_p4 = pnand %p102_p3, %p96_p0 }
   0xb   :  { %106 = shalt.err (!%p103_p4)
}
   0xc   :  { %s154_s12 = smov 256   ;;  %s155_s13 = smov 128  }
   0xd   :  { %s156_s14 = smov 8   ;;  %s157_s17 = smov [#allocation5]  }
   0xe   :  { %21 = dma.hbm_to_vmem [thread:$0]  %s189_s0, 1024, %s16_s10, [#allocation3], %s154_s12, %s155_s13, %s156_s14  }
   0xf   :  { %s28_s18 = sshll.u32 %s157_s17, 4  ;;  %s29_s18 = int_to_ptr.vmem [resolvable:$true] %s28_s18 }
  0x10   :  { %s115_s19 = scalar_lea.vmem %s29_s18, 64  ;;  %p120_p6 = scmp.lt.s32.totalorder %s29_s18, %s29_s18 }
  0x11   :  { %p116_p5 = scmp.ne.s32.totalorder %s29_s18, %s115_s19  ;;  %p121_p7 = scmp.lt.s32.totalorder %s115_s19, %s115_s19 }
  0x13   :  { %p122_p8 = por %p121_p7, %p120_p6 }
  0x15   :  { %p123_p9 = pnand %p122_p8, %p116_p5 }
  0x17   :  { %126 = shalt.err (!%p123_p9)
}
  0x18   :  { %31 = dma.hbm_to_vmem [thread:$0]  %s190_s1, 64, %s29_s18, [#allocation6]  }
  0x19   :  { %147 = dma.done.wait [#allocation3], 1024  }
  0x1a   :  { %148 = vsyncadd [#allocation3], 4294966272 }
  0x1b   :  { %149 = dma.done.wait [#allocation6], 64  }
  0x1c   :  { %150 = vsyncadd [#allocation6], 4294967232  ;;  %s158_s22 = smov [#allocation7]   ;;  %v38_v0 = vld [vmem:[#allocation2] sm:$0xff]  ;;  %v39_v1 = vld [vmem:[#allocation2 + $0x8] sm:$0xff] }
  0x1d   :  { %s68_s0 = sshll.u32 %s158_s22, 4  ;;  %v40_v2 = vld [vmem:[#allocation2 + $0x10] sm:$0xff]  ;;  %46 = vst [vmem:[#allocation7] sm:$0xff] %v38_v0  ;;  %47 = vst [vmem:[#allocation7 + $0x8] sm:$0xff] %v39_v1  ;;  %v41_v3 = vld [vmem:[#allocation2 + $0x18] sm:$0xff]  ;;  %s69_s0 = int_to_ptr.vmem [resolvable:$true] %s68_s0 }
  0x1e   :  { %48 = vst [vmem:[#allocation7 + $0x10] sm:$0xff] %v40_v2  ;;  %v42_v4 = vld [vmem:[#allocation2 + $0x20] sm:$0xff]  ;;  %v43_v5 = vld [vmem:[#allocation2 + $0x28] sm:$0xff]  ;;  %49 = vst [vmem:[#allocation7 + $0x18] sm:$0xff] %v41_v3  ;;  %s127_s1 = scalar_lea.vmem %s69_s0, 1024  ;;  %p132_p11 = scmp.lt.s32.totalorder %s69_s0, %s69_s0 }
  0x1f   :  { %50 = vst [vmem:[#allocation7 + $0x20] sm:$0xff] %v42_v4  ;;  %51 = vst [vmem:[#allocation7 + $0x28] sm:$0xff] %v43_v5  ;;  %v44_v6 = vld [vmem:[#allocation2 + $0x30] sm:$0xff]  ;;  %v45_v7 = vld [vmem:[#allocation2 + $0x38] sm:$0xff]  ;;  %p128_p10 = scmp.ne.s32.totalorder %s69_s0, %s127_s1  ;;  %p133_p12 = scmp.lt.s32.totalorder %s127_s1, %s127_s1 }
  0x20   :  { %v54_v8 = vld [vmem:[#allocation5] sm:$0x7]  ;;  %52 = vst [vmem:[#allocation7 + $0x30] sm:$0xff] %v44_v6  ;;  %53 = vst [vmem:[#allocation7 + $0x38] sm:$0xff] %v45_v7 }
  0x21   :  { %55 = vst [vmem:[#allocation7 + $0x1] sm:$0x7] %v54_v8  ;;  %56 = vst [vmem:[#allocation7 + $0x9] sm:$0x7] %v54_v8  ;;  %p134_p13 = por %p133_p12, %p132_p11 }
  0x22   :  { %57 = vst [vmem:[#allocation7 + $0x11] sm:$0x7] %v54_v8  ;;  %58 = vst [vmem:[#allocation7 + $0x19] sm:$0x7] %v54_v8 }
  0x23   :  { %59 = vst [vmem:[#allocation7 + $0x21] sm:$0x7] %v54_v8  ;;  %60 = vst [vmem:[#allocation7 + $0x29] sm:$0x7] %v54_v8  ;;  %p135_p0 = pnand %p134_p13, %p128_p10 }
  0x24   :  { %61 = vst [vmem:[#allocation7 + $0x31] sm:$0x7] %v54_v8  ;;  %62 = vst [vmem:[#allocation7 + $0x39] sm:$0x7] %v54_v8 }
  0x25   :  { %138 = shalt.err (!%p135_p0)
}
  0x26   :  { %74 = dma.vmem_to_hbm [thread:$0]  %s69_s0, 1024, %s191_s2, [#allocation4], %s155_s13, %s154_s12, %s156_s14  }
  0x27   :  { %151 = dma.done.wait [#allocation4], 1024  }
  0x28   :  { %152 = vsyncadd [#allocation4], 4294966272 }
  0x29   :  { %78 = vsyncpa [#allocation3], 1 }
  0x2a   :  { %79 = vsyncpa [#allocation6], 1 }
  0x2b   :  { %80 = vsyncpa [#allocation4], 1 }

</bundles_post_ra>
